<compile_context>
chip_gen: v5e
topology: v5e:2x2
jax: 0.10.0
libtpu: 0.0.40
codegen_flags: <defaults>
</compile_context>

<pallas_src>
from functools import partial

import jax
import jax.numpy as jnp
from jax.experimental import pallas as pl
from jax.experimental.pallas import tpu as pltpu


def senet_kernel(x_ref, w1_ref, b1_ref, w2_ref, b2_ref, o_ref, *, inv_hw, use_mxu):
    # x_ref / o_ref: [BT, C, HW]  (BT batch rows resident in VMEM)

    # --- squeeze: global average pool over the spatial (lane) axis -> [BT, C]
    # (f32 accumulation; inv_hw is a Python-constant reciprocal of the true H*W)
    pooled = jnp.sum(x_ref[...], axis=-1, dtype=jnp.float32) * inv_hw

    # --- excitation (f32) ---
    if use_mxu:
        # Realistic channel counts: let the otherwise-idle MXU do the FCs.
        h = jnp.dot(pooled, w1_ref[...], preferred_element_type=jnp.float32) + b1_ref[...]
        h = jnp.maximum(h, 0.0)
        s = jnp.dot(h, w2_ref[...], preferred_element_type=jnp.float32) + b2_ref[...]
    else:
        # Tiny C / hidden: broadcast-multiply + reductions on the VPU/XLU.
        # FC1: [BT,C,1] * [1,C,hidden] -> reduce over C (sublanes) -> [BT, hidden]
        h = jnp.sum(pooled[:, :, None] * w1_ref[...][None, :, :], axis=1) + b1_ref[...]
        h = jnp.maximum(h, 0.0)
        # FC2 (w2 pre-transposed to [C, hidden]):
        # [BT,1,hidden] * [1,C,hidden] -> reduce over hidden (lanes) -> [BT, C]
        s = jnp.sum(h[:, None, :] * w2_ref[...][None, :, :], axis=-1) + b2_ref[...]

    # --- scale: per-(batch, channel) scalar broadcast over the lane axis.
    # Multiply in the input's native dtype (halves vreg/store traffic for bf16
    # on v6e/v7x; identical numerics for f32 inputs).
    o_ref[...] = x_ref[...] * s.astype(o_ref.dtype)[:, :, None]


def _pick_batch_tile(B, bytes_per_batch_elem, target_bytes=2 * 1024 * 1024):
    """Pick how many batch rows to pack per grid step (~2 MiB per block buffer)."""
    bt = max(1, min(B, target_bytes // max(1, bytes_per_batch_elem)))
    # Keep at least two grid steps when B >= 2 so v7x's two TensorCores both work.
    if B >= 2 and bt >= B:
        bt = max(1, B // 2)
    # No ragged batch blocks: force BT to divide B.
    while B % bt != 0:
        bt -= 1
    return bt


def senet_forward(x, w1, b1, w2, b2):
    """x: [B, C, H, W]; w1: [C, hidden]; b1: [hidden]; w2: [hidden, C]; b2: [C]."""
    B, C, H, W = x.shape
    HW = H * W
    hidden = w1.shape[1]
    itemsize = jnp.dtype(x.dtype).itemsize

    # Flatten spatial onto the lane axis (metadata-only reshape, no HBM traffic,
    # no padding / slicing round-trips).
    x3 = x.reshape(B, C, HW)

    BT = _pick_batch_tile(B, C * HW * itemsize)
    grid = (B // BT,)

    use_mxu = C >= 128
    if use_mxu:
        w2_arg = w2.astype(jnp.float32)        # [hidden, C] for the MXU path
        w2_block = (hidden, C)
    else:
        w2_arg = w2.T.astype(jnp.float32)      # [C, hidden] -> FC2 is a lane reduction
        w2_block = (C, hidden)

    # Explicit VMEM budget: in + out double-buffered + resident weights + margin.
    block_bytes = BT * C * HW * itemsize
    weight_bytes = (2 * C * hidden + hidden + C) * 4
    vmem_need = 4 * block_bytes + 2 * weight_bytes + (2 << 20)
    vmem_limit = int(min(max(vmem_need, 16 << 20), 48 << 20))

    cost = pl.CostEstimate(
        flops=2 * B * C * HW + 4 * B * C * hidden,
        transcendentals=0,
        bytes_accessed=2 * B * C * HW * itemsize + weight_bytes,
    )

    kernel = partial(senet_kernel, inv_hw=1.0 / float(HW), use_mxu=use_mxu)

    out = pl.pallas_call(
        kernel,
        out_shape=jax.ShapeDtypeStruct((B, C, HW), x3.dtype),
        grid=grid,
        in_specs=[
            pl.BlockSpec((BT, C, HW), lambda b: (b, 0, 0)),     # batched x slab
            pl.BlockSpec((C, hidden), lambda b: (0, 0)),        # w1 (resident)
            pl.BlockSpec((1, hidden), lambda b: (0, 0)),        # b1 (resident)
            pl.BlockSpec(w2_block, lambda b: (0, 0)),           # w2 / w2^T (resident)
            pl.BlockSpec((1, C), lambda b: (0, 0)),             # b2 (resident)
        ],
        out_specs=pl.BlockSpec((BT, C, HW), lambda b: (b, 0, 0)),
        compiler_params=pltpu.CompilerParams(
            dimension_semantics=("parallel",),
            vmem_limit_bytes=vmem_limit,
        ),
        cost_estimate=cost,
    )(
        x3,
        w1.astype(jnp.float32),
        b1.reshape(1, hidden).astype(jnp.float32),
        w2_arg,
        b2.reshape(1, C).astype(jnp.float32),
    )

    return out.reshape(B, C, H, W)


def senet_reference(x, w1, b1, w2, b2):
    pooled = jnp.mean(x.astype(jnp.float32), axis=(2, 3))   # [B, C]
    h = jnp.maximum(pooled @ w1 + b1, 0.0)                   # [B, hidden]
    s = h @ w2 + b2                                          # [B, C]
    return (x.astype(jnp.float32) * s[:, :, None, None]).astype(x.dtype)


if __name__ == "__main__":
    r = 16

    def make_inputs(key, B, C, H, W):
        hidden = C // r
        kx, k1, k2, k3, k4 = jax.random.split(key, 5)
        x = jax.random.normal(kx, (B, C, H, W), dtype=jnp.float32)
        # Deterministic init mimicking nn.Linear (uniform +/- 1/sqrt(fan_in)).
        bound1 = 1.0 / float(C) ** 0.5
        w1 = jax.random.uniform(k1, (C, hidden), jnp.float32, -bound1, bound1)
        b1 = jax.random.uniform(k2, (hidden,), jnp.float32, -bound1, bound1)
        bound2 = 1.0 / float(hidden) ** 0.5
        w2 = jax.random.uniform(k3, (hidden, C), jnp.float32, -bound2, bound2)
        b2 = jax.random.uniform(k4, (C,), jnp.float32, -bound2, bound2)
        return x, w1, b1, w2, b2

    key = jax.random.PRNGKey(0)
    k_a, k_b = jax.random.split(key, 2)

    # Primary shapes consistent with the module (r=16 -> C=32 gives hidden=2).
    x, w1, b1, w2, b2 = make_inputs(k_a, 2, 32, 16, 16)
    out = jax.block_until_ready(senet_forward(x, w1, b1, w2, b2))
    ref = senet_reference(x, w1, b1, w2, b2)
    assert out.shape == x.shape
    assert jnp.allclose(out, ref, atol=1e-5, rtol=1e-5), "mismatch vs reference (B=2)"

    # Second config exercises batch packing (BT > 1, grid of 2 steps).
    x, w1, b1, w2, b2 = make_inputs(k_b, 8, 32, 16, 16)
    out = jax.block_until_ready(senet_forward(x, w1, b1, w2, b2))
    ref = senet_reference(x, w1, b1, w2, b2)
    assert jnp.allclose(out, ref, atol=1e-5, rtol=1e-5), "mismatch vs reference (B=8)"

    print("KERNEL_OK")
</pallas_src>

<mosaic_0001>
module attributes {stable_mosaic.version = 11 : i64} {
  func.func @senet_kernel(%arg0: i32, %arg1: memref<1x32x256xf32, #tpu.memory_space<vmem>>, %arg2: memref<32x2xf32, #tpu.memory_space<vmem>>, %arg3: memref<1x2xf32, #tpu.memory_space<vmem>>, %arg4: memref<32x2xf32, #tpu.memory_space<vmem>>, %arg5: memref<1x32xf32, #tpu.memory_space<vmem>>, %arg6: memref<1x32x256xf32, #tpu.memory_space<vmem>>) attributes {dimension_semantics = [#tpu.dimension_semantics<parallel>], iteration_bounds = array<i64: 2>, scalar_prefetch = 0 : i64, scratch_operands = 0 : i64, tpu.core_type = #tpu.core_type<tc>, window_params = [{transform_indices = @transform_0, window_bounds = array<i64: 1, 32, 256>}, {pipeline_mode = #tpu.pipeline_mode<synchronous>, transform_indices = @transform_1, window_bounds = array<i64: 32, 2>}, {pipeline_mode = #tpu.pipeline_mode<synchronous>, transform_indices = @transform_2, window_bounds = array<i64: 1, 2>}, {pipeline_mode = #tpu.pipeline_mode<synchronous>, transform_indices = @transform_3, window_bounds = array<i64: 32, 2>}, {pipeline_mode = #tpu.pipeline_mode<synchronous>, transform_indices = @transform_4, window_bounds = array<i64: 1, 32>}, {transform_indices = @transform_5, window_bounds = array<i64: 1, 32, 256>}]} {
    %c0 = arith.constant 0 : index
    %c0_0 = arith.constant 0 : index
    %c0_1 = arith.constant 0 : index
    %0 = vector.load %arg1[%c0, %c0_0, %c0_1] : memref<1x32x256xf32, #tpu.memory_space<vmem>>, vector<1x32x256xf32>
    %cst = arith.constant dense<0.000000e+00> : vector<1x32xf32>
    %1 = vector.multi_reduction <add>, %0, %cst [2] : vector<1x32x256xf32> to vector<1x32xf32>
    %cst_2 = arith.constant 3.906250e-03 : f32
    %2 = vector.broadcast %cst_2 : f32 to vector<1x32xf32>
    %3 = arith.mulf %1, %2 : vector<1x32xf32>
    %4 = vector.shape_cast %3 : vector<1x32xf32> to vector<1x32x1xf32>
    %c0_3 = arith.constant 0 : index
    %c0_4 = arith.constant 0 : index
    %5 = vector.load %arg2[%c0_3, %c0_4] : memref<32x2xf32, #tpu.memory_space<vmem>>, vector<32x2xf32>
    %6 = vector.shape_cast %5 : vector<32x2xf32> to vector<1x32x2xf32>
    %7 = vector.broadcast %4 : vector<1x32x1xf32> to vector<1x32x2xf32>
    %8 = arith.mulf %7, %6 : vector<1x32x2xf32>
    %cst_5 = arith.constant dense<0.000000e+00> : vector<1x2xf32>
    %9 = vector.multi_reduction <add>, %8, %cst_5 [1] : vector<1x32x2xf32> to vector<1x2xf32>
    %c0_6 = arith.constant 0 : index
    %c0_7 = arith.constant 0 : index
    %10 = vector.load %arg3[%c0_6, %c0_7] : memref<1x2xf32, #tpu.memory_space<vmem>>, vector<1x2xf32>
    %11 = arith.addf %9, %10 : vector<1x2xf32>
    %cst_8 = arith.constant 0.000000e+00 : f32
    %12 = vector.broadcast %cst_8 : f32 to vector<1x2xf32>
    %13 = arith.maximumf %11, %12 : vector<1x2xf32>
    %14 = vector.shape_cast %13 : vector<1x2xf32> to vector<1x1x2xf32>
    %c0_9 = arith.constant 0 : index
    %c0_10 = arith.constant 0 : index
    %15 = vector.load %arg4[%c0_9, %c0_10] : memref<32x2xf32, #tpu.memory_space<vmem>>, vector<32x2xf32>
    %16 = vector.shape_cast %15 : vector<32x2xf32> to vector<1x32x2xf32>
    %17 = vector.broadcast %14 : vector<1x1x2xf32> to vector<1x32x2xf32>
    %18 = arith.mulf %17, %16 : vector<1x32x2xf32>
    %cst_11 = arith.constant dense<0.000000e+00> : vector<1x32xf32>
    %19 = vector.multi_reduction <add>, %18, %cst_11 [2] : vector<1x32x2xf32> to vector<1x32xf32>
    %c0_12 = arith.constant 0 : index
    %c0_13 = arith.constant 0 : index
    %20 = vector.load %arg5[%c0_12, %c0_13] : memref<1x32xf32, #tpu.memory_space<vmem>>, vector<1x32xf32>
    %21 = arith.addf %19, %20 : vector<1x32xf32>
    %c0_14 = arith.constant 0 : index
    %c0_15 = arith.constant 0 : index
    %c0_16 = arith.constant 0 : index
    %22 = vector.load %arg1[%c0_14, %c0_15, %c0_16] : memref<1x32x256xf32, #tpu.memory_space<vmem>>, vector<1x32x256xf32>
    %23 = vector.shape_cast %21 : vector<1x32xf32> to vector<1x32x1xf32>
    %24 = vector.broadcast %23 : vector<1x32x1xf32> to vector<1x32x256xf32>
    %25 = arith.mulf %22, %24 : vector<1x32x256xf32>
    %c0_17 = arith.constant 0 : index
    %c0_18 = arith.constant 0 : index
    %c0_19 = arith.constant 0 : index
    %26 = vector.load %arg6[%c0_17, %c0_18, %c0_19] : memref<1x32x256xf32, #tpu.memory_space<vmem>>, vector<1x32x256xf32>
    tpu.vector_store %arg6[%c0_17, %c0_18, %c0_19], %25 {strides = array<i32>} : memref<1x32x256xf32, #tpu.memory_space<vmem>>, vector<1x32x256xf32>,
    return
  }
  func.func @transform_0(%arg0: i32) -> (i32, i32, i32) {
    %c0_i32 = arith.constant 0 : i32
    %c0_i32_0 = arith.constant 0 : i32
    %c0_i32_1 = arith.constant 0 : i32
    return %arg0, %c0_i32, %c0_i32_0 : i32, i32, i32
  }
  func.func @transform_1(%arg0: i32) -> (i32, i32) {
    %c0_i32 = arith.constant 0 : i32
    %c0_i32_0 = arith.constant 0 : i32
    %c0_i32_1 = arith.constant 0 : i32
    return %c0_i32, %c0_i32_0 : i32, i32
  }
  func.func @transform_2(%arg0: i32) -> (i32, i32) {
    %c0_i32 = arith.constant 0 : i32
    %c0_i32_0 = arith.constant 0 : i32
    %c0_i32_1 = arith.constant 0 : i32
    return %c0_i32, %c0_i32_0 : i32, i32
  }
  func.func @transform_3(%arg0: i32) -> (i32, i32) {
    %c0_i32 = arith.constant 0 : i32
    %c0_i32_0 = arith.constant 0 : i32
    %c0_i32_1 = arith.constant 0 : i32
    return %c0_i32, %c0_i32_0 : i32, i32
  }
  func.func @transform_4(%arg0: i32) -> (i32, i32) {
    %c0_i32 = arith.constant 0 : i32
    %c0_i32_0 = arith.constant 0 : i32
    %c0_i32_1 = arith.constant 0 : i32
    return %c0_i32, %c0_i32_0 : i32, i32
  }
  func.func @transform_5(%arg0: i32) -> (i32, i32, i32) {
    %c0_i32 = arith.constant 0 : i32
    %c0_i32_0 = arith.constant 0 : i32
    %c0_i32_1 = arith.constant 0 : i32
    return %arg0, %c0_i32, %c0_i32_0 : i32, i32, i32
  }
}

</mosaic_0001>

<bundles_post_ra>
// kernel: tpu_custom_call.1
= control target key start
LH: loop header
LB: loop body
LE: loop exit
PB: predicated region body
PF: predicated region fallthrough
CT: control target
= control target key end

     0   :  { %10 = vsyncpa [#allocation3], 0  ;;  %s890_s0 = inlined_call_operand.hbm [shape: f32[2,32,256], index: 0, kind: input, shape index: {}]   ;;  %s891_s1 = inlined_call_operand.vmem [shape: f32[32,2], index: 1, kind: input, shape index: {}]   ;;  %s892_s2 = inlined_call_operand.vmem [shape: f32[1,2], index: 2, kind: input, shape index: {}]   ;;  %s893_s3 = inlined_call_operand.vmem [shape: f32[32,2], index: 3, kind: input, shape index: {}]   ;;  %s894_s4 = inlined_call_operand.vmem [shape: f32[1,32], index: 4, kind: input, shape index: {}]   ;;  %s895_s5 = inlined_call_operand.hbm [shape: f32[2,32,256], index: 5, kind: output, shape index: {}]  }
   0x1   :  { %12 = vsyncpa [#allocation3 + $0x1], 0 }
   0x2   :  { %13 = vsyncpa [#allocation4], 0 }
   0x3   :  { %15 = vsyncpa [#allocation4 + $0x1], 0  ;;  %s683_s18 = smov 0   ;;  %s685_s19 = smov 0  }
   0x4   :  { %s687_s20 = smov 0   ;;  %s689_s21 = smov 0  }
   0x5 LB: > { %s704_s22 = sadd.s32 4294967295, %s646_s21   ;;  %s475_s23 = sadd.s32 4294967294, %s646_s21   ;;  %s646_s21 = sphi %s689_s21, %s905_s21   ;;  %s642_s20 = sphi %s687_s20, %s904_s20   ;;  %s638_s19 = sphi %s685_s19, %s903_s19   ;;  %s634_s18 = sphi %s683_s18, %s902_s18  }
   0x6   : > { %s708_s24 = sadd.s32 1, %s646_s21   ;;  %s28_s25 = sadd.s32 1, %s642_s20 }
   0x7   : > { %s25_s26 = ssub.s32 %s646_s21, %s708_s24  ;;  %p35_p0 = scmp.ne.s32.totalorder %s642_s20, %s638_s19 }
   0x8   : > { %p26_p1 = scmp.eq.s32.totalorder %s25_s26, 0  ;;  %p36_p2 = scmp.eq.s32.totalorder %s646_s21, 0 }
   0x9   : > { %p41_p3 = scmp.ne.s32.totalorder %s638_s19, %s634_s18  ;;  %p42_p4 = scmp.eq.s32.totalorder %s704_s22, 0 }
   0xa   : > { %s720_s27 = scalar_select %p26_p1, %s642_s20, %s28_s25  }
   0xb   : > { %p722_p5 = por %p36_p2, %p35_p0  ;;  %p726_p6 = por %p42_p4, %p41_p3 }
   0xc   : > { %p149_p7 = scmp.eq.s32.totalorder %s704_s22, 1  ;;  %p155_p8 = scmp.eq.s32.totalorder %s475_s23, 1 }
   0xd   : > { %p503_p10 = scmp.lt.s32.totalorder %s646_s21, 2  ;;  %s187_s7 = sand.u32 1, %s642_s20  }
   0xe   : > { %p733_p11 = por %p149_p7, %p35_p0  ;;  %p737_p12 = por %p155_p8, %p41_p3 }
   0xf   : > { %s489_s8 = sshll.u32 %s646_s21, 6  ;;  %s478_s9 = sshll.u32 %s187_s7, 6 }
  0x10   : > { %s196_s12 = scalar_lea.hbm %s890_s0, %s489_s8  ;;  %s191_s14 = scalar_lea.vmem [#allocation2], %s478_s9 }
  0x11   : > { %s197_s13 = sshll.u32 %s196_s12, 4  ;;  %s199_s15 = sshll.u32 %s191_s14, 4  ;;  %s198_s13 = int_to_ptr.hbm [resolvable:$true] %s197_s13  ;;  %s200_s15 = int_to_ptr.vmem [resolvable:$true] %s199_s15 }
  0x12   : > { %p748_p13 = pnand %p503_p10, %p722_p5  ;;  %p481_p0 = scmp.ge.s32.totalorder %s646_s21, 1 }
  0x13   : > { %p207_p1 = scmp.lt.s32.totalorder %s646_s21, 3  ;;  %s188_s17 = scalar_lea.sflag [#allocation3], %s187_s7 }
  0x14   : > { %s550_s23 = sshra.s32 %s198_s13, 4  ;;  %p554_p3 = pneg %p748_p13  ;;  %s551_s23 = int_to_ptr.hbm [resolvable:$true] %s550_s23 }
  0x15   : > { %s552_s25 = scalar_lea.hbm %s551_s23, 64  ;;  %s557_s28 = scalar_lea.hbm %s890_s0, 128 }
  0x16   : > { %p553_p2 = scmp.ne.s32.totalorder %s551_s23, %s552_s25  ;;  %p558_p5 = scmp.lt.s32.totalorder %s551_s23, %s890_s0 }
  0x17   : > { %p559_p8 = scmp.lt.s32.totalorder %s557_s28, %s552_s25 }
  0x18   : > { %p555_p4 = pnand %p554_p3, %p553_p2 }
  0x19   : > { %p560_p10 = por %p559_p8, %p558_p5 }
  0x1a   : > { %p556_p7 = pneg %p555_p4 }
  0x1c   : > { %p561_p9 = pnand %p560_p10, %p556_p7 }
  0x1e   : > { %564 = shalt.err (!%p561_p9)
}
  0x1f   : > { %s648_s7 = smov 256   ;;  %s649_s11 = smov 16  }
  0x20   : > { %498 = dma.hbm_to_vmem [thread:$0]  (!%p748_p13), %s198_s13, 1024, %s200_s15, %s188_s17, %s648_s7, %s648_s7, %s649_s11  }
  0x21   : > { %p208_p2 = pnand %p481_p0, %p207_p1 }
  0x22   : > { %s769_s12 = sand.u32 (!%p208_p2), 1, %s638_s19  }
  0x23   : > { %211 = sbr.rel (%p208_p2) target bundleno = 467 (0x1d3), region = 40  ;;  %s482_s14 = sshll.u32 (!%p208_p2), %s769_s12, 6 }
  0x24   : > { %s214_s23 = scalar_lea.sflag (!%p208_p2), [#allocation3], %s769_s12  ;;  %s217_s25 = scalar_lea.vmem (!%p208_p2), [#allocation2], %s482_s14 }
  0x28   : > { %625 = dma.done.wait (%p726_p6), %s214_s23, 1024  }
  0x29   : > { %627 = vsyncadd (%p726_p6), %s214_s23, 4294966272  ;;  %v318_v0 = vlaneseq  ;;  %v779_v3 = vld [vmem:[%s217_s25] sm:$0xff]  ;;  %v781_v4 = vld [vmem:[%s217_s25 + $0x8] sm:$0xff]  ;;  %vm277_vm0 = vcmask 15360   ;;  %v650_v63 = vmov 0   ;;  %s244_s8 = scalar_lea.vmem [#allocation5], %s482_s14 }
  0x2a   : > { %v783_v5 = vld [vmem:[%s217_s25 + $0x20] sm:$0xff]  ;;  %v253_v6 = vadd.f32 %v781_v4, %v779_v3  ;;  %v787_v7 = vld [vmem:[%s217_s25 + $0x28] sm:$0xff]  ;;  %v796_v10 = vld [vmem:[%s217_s25 + $0x10] sm:$0xff]  ;;  %s490_s28 = sshll.u32 %s704_s22, 6  ;;  %s399_s7 = sshll.u32 %s244_s8, 4  ;;  %s400_s7 = int_to_ptr.vmem [resolvable:$true] %s399_s7 }
  0x2b   : > { %v319_v1 = vshrl.u32 %v318_v0, 7  ;;  %v259_v8 = vadd.f32 %v787_v7, %v783_v5  ;;  %v794_v9 = vld [vmem:[%s894_s4] ss:$0 sm:$0xff]  ;;  %v798_v11 = vld [vmem:[%s217_s25 + $0x18] sm:$0xff]  ;;  %v800_v12 = vld [vmem:[%s217_s25 + $0x30] sm:$0xff]  ;;  %s398_s14 = scalar_lea.hbm %s895_s5, %s490_s28  ;;  %s387_s22 = scalar_lea.sflag [#allocation4], %s769_s12 }
  0x2c   : > { %254 = vadd.xlane.f32.xlu0 %v253_v6  ;;  %v802_v13 = vld [vmem:[%s217_s25 + $0x38] sm:$0xff]  ;;  %v256_v14 = vadd.f32 %v798_v11, %v796_v10  ;;  %v269_v19 = vld [vmem:[%s891_s1] sm:$0xff]  ;;  %v271_v21 = vld [vmem:[%s891_s1 + $0x10] sm:$0xff]  ;;  %s401_s11 = sshll.u32 %s398_s14, 4  ;;  %s600_s15 = scalar_lea.hbm %s895_s5, 128  ;;  %s402_s11 = int_to_ptr.hbm [resolvable:$true] %s401_s11 }
  0x2d   : > { %v332_v2 = vadd.s32 16, %v319_v1  ;;  %542 = vset.pattern.permute.xlu2 %v319_v1  ;;  %260 = vadd.xlane.f32.xlu1 %v259_v8  ;;  %v262_v15 = vadd.f32 %v802_v13, %v800_v12  ;;  %v270_v22 = vld [vmem:[%s891_s1 + $0x8] sm:$0xff]  ;;  %v272_v26 = vld [vmem:[%s891_s1 + $0x18] sm:$0xff]  ;;  %v326_v39 = vadd.s32 8, %v319_v1  ;;  %v291_v45 = vld [vmem:[%s892_s2] sm:$0x1] }
  0x2e   : > { %v338_v46 = vadd.s32 24, %v319_v1  ;;  %v297_v50 = vld [vmem:[%s893_s3 + $0x18] sm:$0xff]  ;;  %v296_v51 = vld [vmem:[%s893_s3 + $0x10] sm:$0xff]  ;;  %v294_v52 = vld [vmem:[%s893_s3] sm:$0xff]  ;;  %s594_s23 = sshra.s32 %s402_s11, 4  ;;  %s595_s23 = int_to_ptr.hbm [resolvable:$true] %s594_s23 }
  0x2f   : > { %544 = vset.pattern.permute.xlu1 %v332_v2  ;;  %543 = vset.pattern.permute.xlu0 %v326_v39  ;;  %v295_v60 = vld [vmem:[%s893_s3 + $0x8] sm:$0xff]  ;;  %s596_s25 = scalar_lea.hbm %s595_s23, 64  ;;  %p601_p0 = scmp.lt.s32.totalorder %s595_s23, %s895_s5 }
  0x30   : > { %p597_p6 = scmp.ne.s32.totalorder %s595_s23, %s596_s25  ;;  %p602_p1 = scmp.lt.s32.totalorder %s600_s15, %s596_s25 }
  0x32   : > { %p598_p9 = pnand %p597_p6, %p733_p11  ;;  %p603_p3 = por %p602_p1, %p601_p0 }
  0x34   : > { %257 = vadd.xlane.f32.xlu0 %v256_v14  ;;  %p599_p13 = pneg %p598_p9 }
  0x35   : > { %322 = vperm.xlu2 %542, %v794_v9   ;;  %263 = vadd.xlane.f32.xlu1 %v262_v15 }
  0x36   : > { %p604_p4 = pnand %p603_p3, %p599_p13 }
  0x3d   : > { %545 = vset.pattern.permute.xlu2 %v338_v46 }
  0x4e   : > { %334 = vperm.xlu1 %544, %v794_v9  }
  0x56   : > { %547 = vset.pattern.permute.xlu1 %v650_v63 }
  0x8f   : > { %v323_v0 = vpop.permute.xlu2 %322 }
  0x9f   : > { %v255_v16 = vpop.xlane.xlu0 %254 }
  0xa0   : > { %v261_v17 = vpop.xlane.xlu1 %260  ;;  %v265_v18 = vmul.f32 0.00390625, %v255_v16 }
  0xa1   : > { %v267_v20 = vmul.f32 0.00390625, %v261_v17 }
  0xa2   : > { %v273_v24 = vmul.f32 %v269_v19, %v265_v18 }
  0xa3   : > { %v275_v29 = vmul.f32 %v271_v21, %v267_v20 }
  0xa4   : > { %v278_v32 = vsel %vm277_vm0, %v273_v24, 0.0 }
  0xa5   : > { %v281_v35 = vsel %vm277_vm0, %v275_v29, 0.0 }
  0xa7   : > { %v258_v23 = vpop.xlane.xlu0 %257 }
  0xa8   : > { %v266_v25 = vmul.f32 0.00390625, %v258_v23  ;;  %v264_v27 = vpop.xlane.xlu1 %263 }
  0xa9   : > { %v268_v28 = vmul.f32 0.00390625, %v264_v27 }
  0xaa   : > { %v274_v30 = vmul.f32 %v270_v22, %v266_v25 }
  0xab   : > { %v276_v31 = vmul.f32 %v272_v26, %v268_v28 }
  0xac   : > { %v279_v33 = vsel %vm277_vm0, %v274_v30, 0.0 }
  0xad   : > { %v280_v34 = vadd.f32 %v279_v33, %v278_v32  ;;  %v283_v36 = vsel %vm277_vm0, %v276_v31, 0.0 }
  0xaf   : > { %v282_v37 = vadd.f32 %v281_v35, %v280_v34 }
  0xb1   : > { %v284_v38 = vadd.f32 %v283_v36, %v282_v37 }
  0xb3   : > { %v285_v40 = vrot.slane %v284_v38, 4 }
  0xb5   : > { %v286_v41 = vadd.f32 %v285_v40, %v284_v38 }
  0xb7   : > { %v287_v42 = vrot.slane %v286_v41, 2 }
  0xb9   : > { %v288_v43 = vadd.f32 %v287_v42, %v286_v41 }
  0xbb   : > { %v289_v44 = vrot.slane %v288_v43, 1 }
  0xbd   : > { %v290_v47 = vadd.f32 %v289_v44, %v288_v43 }
  0xbf   : > { %v292_v48 = vadd.f32 %v291_v45, %v290_v47 }
  0xc0   : > { %v335_v8 = vpop.permute.xlu1 %334 }
  0xc1   : > { %v293_v49 = vmax.f32 %v292_v48, 0.0 }
  0xc3   : > { %v298_v53 = vperm.slane %v293_v49, 0 }
  0xc5   : > { %v302_v54 = vmul.f32 %v298_v53, %v297_v50  ;;  %v301_v55 = vmul.f32 %v298_v53, %v296_v51  ;;  %v299_v56 = vmul.f32 %v298_v53, %v294_v52  ;;  %v300_v61 = vmul.f32 %v298_v53, %v295_v60 }
  0xc7   : > { %v312_v57 = vsel %vm277_vm0, %v302_v54, 0.0  ;;  %v309_v58 = vsel %vm277_vm0, %v301_v55, 0.0  ;;  %v303_v59 = vsel %vm277_vm0, %v299_v56, 0.0  ;;  %v306_v62 = vsel %vm277_vm0, %v300_v61, 0.0 }
  0xc8   : > { %313 = vadd.xlane.f32.xlu1 %v312_v57  ;;  %310 = vadd.xlane.f32.xlu0 %v309_v58 }
  0xc9   : > { %304 = vadd.xlane.f32.xlu2 %v303_v59 }
  0xd1   : > { %307 = vadd.xlane.f32.xlu2 %v306_v62 }
  0xdc   : > { %328 = vperm.xlu0 %543, %v794_v9  }
  0xe4   : > { %548 = vset.pattern.permute.xlu0 %v650_v63 }
  0xe9   : > { %340 = vperm.xlu2 %545, %v794_v9  }
  0xf1   : > { %546 = vset.pattern.permute.xlu2 %v650_v63 }
 0x13b   : > { %v311_v6 = vpop.xlane.xlu0 %310  ;;  %v314_v9 = vpop.xlane.xlu1 %313 }
 0x13c   : > { %v305_v1 = vpop.xlane.xlu2 %304  ;;  %v348_v14 = vadd.f32 %v335_v8, %v311_v6 }
 0x13d   : > { %v346_v2 = vadd.f32 %v323_v0, %v305_v1 }
 0x13f   : > { %352 = vperm.xlu2 %546, %v346_v2  }
 0x144   : > { %v308_v15 = vpop.xlane.xlu2 %307 }
 0x147   : > { %362 = vperm.xlu2 %546, %v348_v14  }
 0x14c   : > { %v341_v18 = vpop.permute.xlu2 %340 }
 0x14d   : > { %v349_v19 = vadd.f32 %v341_v18, %v314_v9 }
 0x14e   : > { %v329_v16 = vpop.permute.xlu0 %328 }
 0x14f   : > { %v347_v17 = vadd.f32 %v329_v16, %v308_v15 }
 0x151   : > { %357 = vperm.xlu1 %547, %v347_v17  }
 0x159   : > { %367 = vperm.xlu1 %547, %v349_v19  }
 0x199   : > { %v353_v20 = vpop.permute.xlu2 %352 }
 0x19a   : > { %v370_v21 = vmul.f32 %v353_v20, %v779_v3  ;;  %v371_v22 = vmul.f32 %v353_v20, %v781_v4 }
 0x19c   : > { %378 = vst [vmem:[%s244_s8] sm:$0xff] %v370_v21 }
 0x19d   : > { %379 = vst [vmem:[%s244_s8 + $0x8] sm:$0xff] %v371_v22 }
 0x1a1   : > { %v363_v23 = vpop.permute.xlu2 %362 }
 0x1a2   : > { %v374_v24 = vmul.f32 %v363_v23, %v783_v5  ;;  %v375_v25 = vmul.f32 %v363_v23, %v787_v7 }
 0x1a4   : > { %382 = vst [vmem:[%s244_s8 + $0x20] sm:$0xff] %v374_v24 }
 0x1a5   : > { %383 = vst [vmem:[%s244_s8 + $0x28] sm:$0xff] %v375_v25 }
 0x1c3   : > { %v358_v26 = vpop.permute.xlu1 %357 }
 0x1c4   : > { %v372_v27 = vmul.f32 %v358_v26, %v796_v10  ;;  %v373_v3 = vmul.f32 %v358_v26, %v798_v11 }
 0x1c6   : > { %380 = vst [vmem:[%s244_s8 + $0x10] sm:$0xff] %v372_v27 }
 0x1c7   : > { %381 = vst [vmem:[%s244_s8 + $0x18] sm:$0xff] %v373_v3 }
 0x1cb   : > { %v368_v4 = vpop.permute.xlu1 %367 }
 0x1cc   : > { %v376_v5 = vmul.f32 %v368_v4, %v800_v12  ;;  %v377_v7 = vmul.f32 %v368_v4, %v802_v13 }
 0x1ce   : > { %384 = vst [vmem:[%s244_s8 + $0x30] sm:$0xff] %v376_v5 }
 0x1cf   : > { %385 = vst [vmem:[%s244_s8 + $0x38] sm:$0xff] %v377_v7 }
 0x1d0   : > { %607 = shalt.err (!%p604_p4)
}
 0x1d1   : > { %s651_s12 = smov 256   ;;  %s652_s26 = smov 16  }
 0x1d2   : > { %493 = dma.vmem_to_hbm [thread:$0]  (%p733_p11), %s400_s7, 1024, %s402_s11, %s387_s22, %s651_s12, %s651_s12, %s652_s26  }
 0x1d3 PF: > { %s416_s8 = sand.u32 1, %s634_s18   ;;  %p901_p7 = scmp.ge.s32.totalorder %s646_s21, 2 }
 0x1d4   : > { %s417_s28 = scalar_lea.sflag [#allocation4], %s416_s8 }
 0x1d5   : > { %p500_p5 = pnand %p901_p7, %p737_p12 }
 0x1d7   : > { %p501_p8 = pneg %p500_p5 }
 0x1d9   : > { %629 = dma.done.wait (%p501_p8), %s417_s28, 1024  }
 0x1da   : > { %631 = vsyncadd (%p501_p8), %s417_s28, 4294966272  ;;  %p18_p10 = scmp.ge.s32.totalorder %s708_s24, 4   ;;  %s902_s18 = smov %s638_s19 }
 0x1db   : > { %s903_s19 = smov %s642_s20  ;;  %s904_s20 = smov %s720_s27 }
 0x1dc   : > { %s905_s21 = smov %s708_s24  ;;  %20 = sbr.rel (!%p18_p10) target bundleno = 5 (0x5), region = 85 }
 0x1e1   :  { %423 = vsyncpa [#allocation3], 1 }
 0x1e2   :  { %425 = vsyncpa [#allocation3 + $0x1], 1 }
 0x1e3   :  { %426 = vsyncpa [#allocation4], 1 }
 0x1e4   :  { %428 = vsyncpa [#allocation4 + $0x1], 1 }

</bundles_post_ra>
